<compile_context>
chip_gen: v6e
topology: v6e:2x2x1
jax: 0.10.0
libtpu: 0.0.40
codegen_flags: <defaults>
</compile_context>

<pallas_src>
import functools

import jax
import jax.numpy as jnp
from jax.experimental import pallas as pl
from jax.experimental.pallas import tpu as pltpu

LANES = 128
ROW_ALIGN = 16                         # min sublane rows for f32/bf16 tiles
ALIGN = ROW_ALIGN * LANES              # element alignment of the kernel's slab
CHUNK_ROWS = 1024                      # inner-loop chunk (bounds VMEM temporaries)
INPUT_VMEM_BUDGET = 16 * 1024 * 1024   # double-buffered input tiles
HARD_TM_CAP = 16384                    # absolute cap on rows per grid step
VMEM_LIMIT_BYTES = 32 * 1024 * 1024    # > v5e's 16 MiB default, < v7x's 64 MiB physical


def _ceil_to(x, m):
    return -(-x // m) * m


def _num_tensorcores():
    # Only v7x exposes 2 TensorCores that a "parallel" grid axis is sharded
    # across; on single-TC v5e/v6e a size-2 axis is just a serial loop with an
    # extra accumulator slot, so keep it at 1 there.
    try:
        kind = jax.devices()[0].device_kind.lower()
    except Exception:
        return 1
    return 2 if ("v7" in kind or "7x" in kind) else 1


def _make_dice_kernel(tm, chunk, n_chunks, tiles_per_core, valid_rows,
                      mask_needed, acc_rows):
    def fold(x):
        # (chunk, 128) -> (acc_rows, 128): acc_rows/8 independent vreg chains.
        return jnp.sum(x.reshape(-1, acc_rows, LANES), axis=0)

    def kernel(p_ref, t_ref, inter_ref, sum_ref):
        # Output blocks depend only on the parallel core axis, so they stay
        # resident in VMEM across the whole reduction axis.
        @pl.when(pl.program_id(1) == 0)
        def _init():
            inter_ref[...] = jnp.zeros_like(inter_ref)
            sum_ref[...] = jnp.zeros_like(sum_ref)

        row_off = (pl.program_id(0) * tiles_per_core + pl.program_id(1)) * tm

        def process_tile(masked):
            def chunk_body(c, carry):
                if isinstance(c, int):
                    start = c * chunk
                else:
                    start = pl.multiple_of(c * chunk, chunk)
                p = p_ref[pl.ds(start, chunk), :].astype(jnp.float32)
                t = t_ref[pl.ds(start, chunk), :].astype(jnp.float32)
                if masked:
                    rows = (row_off + start
                            + jax.lax.broadcasted_iota(jnp.int32, (chunk, LANES), 0))
                    valid = rows < valid_rows
                    p = jnp.where(valid, p, 0.0)
                    t = jnp.where(valid, t, 0.0)
                inter_ref[...] += fold(p * t)
                sum_ref[...] += fold(p + t)   # sum(p)+sum(t) fused as sum(p+t)
                return carry

            if n_chunks == 1:
                chunk_body(0, 0)
            else:
                jax.lax.fori_loop(0, n_chunks, chunk_body, 0)

        if not mask_needed:
            process_tile(False)
        else:
            # Only the tile(s) overrunning the (M, 128) slab pay for the mask;
            # all other steps take the unmasked fast path.
            @pl.when(row_off + tm <= valid_rows)
            def _fast():
                process_tile(False)

            @pl.when(row_off + tm > valid_rows)
            def _tail():
                process_tile(True)

    return kernel


def _run_main_kernel(p2d, t2d):
    M = p2d.shape[0]                       # multiple of ROW_ALIGN
    # VMEM per tile-row for the double-buffered input tiles (both operands).
    bytes_per_row = 2 * LANES * (p2d.dtype.itemsize + t2d.dtype.itemsize)
    tm_max = min(HARD_TM_CAP,
                 (INPUT_VMEM_BUDGET // bytes_per_row) // CHUNK_ROWS * CHUNK_ROWS)
    tm_max = max(tm_max, CHUNK_ROWS)

    if M >= CHUNK_ROWS:
        TM = min(tm_max, _ceil_to(M, CHUNK_ROWS))
        chunk = CHUNK_ROWS
    else:
        TM = M
        chunk = M
    n_chunks = TM // chunk
    acc_rows = next(c for c in (64, 32, 16) if chunk % c == 0)

    T = -(-M // TM)                        # number of row tiles
    ncores = min(_num_tensorcores(), T)
    K = -(-T // ncores)                    # tiles per core (reduction axis)
    mask_needed = (ncores * K * TM) != M
    clamp_needed = (ncores * K) != T

    if clamp_needed:
        # Fully-OOB tiles re-read the last real tile; the in-kernel row mask
        # zeroes their contribution, so nothing is double counted.
        def row_block(c, i):
            return jnp.minimum(c * K + i, T - 1)
    else:
        def row_block(c, i):
            return c * K + i

    in_spec = pl.BlockSpec((TM, LANES), lambda c, i: (row_block(c, i), 0))
    out_spec = pl.BlockSpec((None, acc_rows, LANES), lambda c, i: (c, 0, 0))
    out_shape = jax.ShapeDtypeStruct((ncores, acc_rows, LANES), jnp.float32)

    inter_part, sum_part = pl.pallas_call(
        _make_dice_kernel(TM, chunk, n_chunks, K, M, mask_needed, acc_rows),
        out_shape=(out_shape, out_shape),
        grid_spec=pltpu.PrefetchScalarGridSpec(
            num_scalar_prefetch=0,
            grid=(ncores, K),
            in_specs=[in_spec, in_spec],
            out_specs=(out_spec, out_spec),
        ),
        compiler_params=pltpu.CompilerParams(
            dimension_semantics=("parallel", "arbitrary"),
            vmem_limit_bytes=VMEM_LIMIT_BYTES),
    )(p2d, t2d)

    return jnp.sum(inter_part), jnp.sum(sum_part)


def _canonical(x):
    # 8-bit / bool / integer inputs would violate the 8-bit (32,128) minimum
    # tile with 16-row-aligned blocks (and need a float product anyway), so
    # promote them once in the wrapper.  bf16/f16/f32 stay native in HBM.
    if (not jnp.issubdtype(x.dtype, jnp.floating)) or x.dtype.itemsize < 2:
        return x.astype(jnp.float32)
    return x


def _dice_partial_sums(predict, target):
    predict = _canonical(predict)
    target = _canonical(target)
    n = predict.size

    p_flat = predict.reshape(-1)
    t_flat = target.reshape(-1)

    n_main = (n // ALIGN) * ALIGN          # 2048-element-aligned prefix
    inter = jnp.zeros((), jnp.float32)
    sum_pt = jnp.zeros((), jnp.float32)

    if n_main > 0:
        p2d = (p_flat if n_main == n else p_flat[:n_main]).reshape(-1, LANES)
        t2d = (t_flat if n_main == n else t_flat[:n_main]).reshape(-1, LANES)
        inter_k, sum_k = _run_main_kernel(p2d, t2d)
        inter = inter + inter_k
        sum_pt = sum_pt + sum_k

    if n_main < n:
        # <2048-element residual: plain jnp in the wrapper, so the kernel never
        # needs a full-array pad / copy in HBM.
        p_res = p_flat[n_main:].astype(jnp.float32)
        t_res = t_flat[n_main:].astype(jnp.float32)
        inter = inter + jnp.sum(p_res * t_res)
        sum_pt = sum_pt + jnp.sum(p_res) + jnp.sum(t_res)

    return inter, sum_pt


@functools.partial(jax.jit, static_argnames=("smooth",))
def binary_dice(predict, target, smooth=1):
    """Pallas-TPU implementation of BinaryDice.forward."""
    assert predict.shape == target.shape, "predict/target must match shapes"
    inter, sum_pt = _dice_partial_sums(predict, target)
    smooth_f = jnp.float32(smooth)
    return (2.0 * inter + smooth_f) / (sum_pt + smooth_f)


if __name__ == "__main__":
    key = jax.random.PRNGKey(0)
    kp, kt = jax.random.split(key)
    # Small NCHW-style shapes, consistent with a binary segmentation head.
    x_shape = (2, 4, 16, 16)
    predict = jax.nn.sigmoid(jax.random.normal(kp, x_shape, jnp.float32))
    target = (jax.random.uniform(kt, x_shape) > 0.5).astype(jnp.float32)

    dice = binary_dice(predict, target, smooth=1)
    dice = jax.block_until_ready(dice)

    # Pure-JAX reference check.
    inter_ref = jnp.sum(predict * target)
    ref = (2.0 * inter_ref + 1.0) / (jnp.sum(predict) + jnp.sum(target) + 1.0)
    assert jnp.allclose(dice, ref, rtol=1e-5, atol=1e-6), (dice, ref)

    print("KERNEL_OK")
</pallas_src>

<mosaic_0001>
module attributes {stable_mosaic.version = 11 : i64} {
  func.func @kernel(%arg0: i32, %arg1: i32, %arg2: memref<16x128xf32, #tpu.memory_space<vmem>>, %arg3: memref<16x128xf32, #tpu.memory_space<vmem>>, %arg4: memref<1x16x128xf32, #tpu.memory_space<vmem>>, %arg5: memref<1x16x128xf32, #tpu.memory_space<vmem>>) attributes {dimension_semantics = [#tpu.dimension_semantics<parallel>, #tpu.dimension_semantics<arbitrary>], iteration_bounds = array<i64: 1, 1>, scalar_prefetch = 0 : i64, scratch_operands = 0 : i64, tpu.core_type = #tpu.core_type<tc>, window_params = [{transform_indices = @transform_0, window_bounds = array<i64: 16, 128>}, {transform_indices = @transform_1, window_bounds = array<i64: 16, 128>}, {transform_indices = @transform_2, window_bounds = array<i64: 1, 16, 128>}, {transform_indices = @transform_3, window_bounds = array<i64: 1, 16, 128>}]} {
    %c0_i32 = arith.constant 0 : i32
    %0 = arith.cmpi eq, %arg1, %c0_i32 : i32
    %1 = arith.extui %0 : i1 to i32
    %c0_i32_0 = arith.constant 0 : i32
    %2 = arith.cmpi ne, %1, %c0_i32_0 : i32
    scf.if %2 {
      %cst_17 = arith.constant 0.000000e+00 : f32
      %23 = vector.broadcast %cst_17 : f32 to vector<16x128xf32>
      %c0_18 = arith.constant 0 : index
      %c0_19 = arith.constant 0 : index
      %c0_20 = arith.constant 0 : index
      %24 = vector.load %arg4[%c0_18, %c0_19, %c0_20] : memref<1x16x128xf32, #tpu.memory_space<vmem>>, vector<1x16x128xf32>
      %25 = vector.shape_cast %24 : vector<1x16x128xf32> to vector<16x128xf32>
      %26 = vector.shape_cast %23 : vector<16x128xf32> to vector<1x16x128xf32>
      tpu.vector_store %arg4[%c0_18, %c0_19, %c0_20], %26 {strides = array<i32>} : memref<1x16x128xf32, #tpu.memory_space<vmem>>, vector<1x16x128xf32>,
      %cst_21 = arith.constant 0.000000e+00 : f32
      %27 = vector.broadcast %cst_21 : f32 to vector<16x128xf32>
      %c0_22 = arith.constant 0 : index
      %c0_23 = arith.constant 0 : index
      %c0_24 = arith.constant 0 : index
      %28 = vector.load %arg5[%c0_22, %c0_23, %c0_24] : memref<1x16x128xf32, #tpu.memory_space<vmem>>, vector<1x16x128xf32>
      %29 = vector.shape_cast %28 : vector<1x16x128xf32> to vector<16x128xf32>
      %30 = vector.shape_cast %27 : vector<16x128xf32> to vector<1x16x128xf32>
      tpu.vector_store %arg5[%c0_22, %c0_23, %c0_24], %30 {strides = array<i32>} : memref<1x16x128xf32, #tpu.memory_space<vmem>>, vector<1x16x128xf32>,
    } else {
    }
    %c0 = arith.constant 0 : index
    %c0_1 = arith.constant 0 : index
    %3 = vector.load %arg2[%c0, %c0_1] : memref<16x128xf32, #tpu.memory_space<vmem>>, vector<16x128xf32>
    %c0_2 = arith.constant 0 : index
    %c0_3 = arith.constant 0 : index
    %4 = vector.load %arg3[%c0_2, %c0_3] : memref<16x128xf32, #tpu.memory_space<vmem>>, vector<16x128xf32>
    %c0_4 = arith.constant 0 : index
    %c0_5 = arith.constant 0 : index
    %c0_6 = arith.constant 0 : index
    %5 = vector.load %arg4[%c0_4, %c0_5, %c0_6] : memref<1x16x128xf32, #tpu.memory_space<vmem>>, vector<1x16x128xf32>
    %6 = vector.shape_cast %5 : vector<1x16x128xf32> to vector<16x128xf32>
    %7 = arith.mulf %3, %4 : vector<16x128xf32>
    %8 = vector.shape_cast %7 : vector<16x128xf32> to vector<1x16x128xf32>
    %cst = arith.constant dense<0.000000e+00> : vector<16x128xf32>
    %9 = vector.multi_reduction <add>, %8, %cst [0] : vector<1x16x128xf32> to vector<16x128xf32>
    %10 = arith.addf %6, %9 : vector<16x128xf32>
    %c0_7 = arith.constant 0 : index
    %c0_8 = arith.constant 0 : index
    %c0_9 = arith.constant 0 : index
    %11 = vector.load %arg4[%c0_7, %c0_8, %c0_9] : memref<1x16x128xf32, #tpu.memory_space<vmem>>, vector<1x16x128xf32>
    %12 = vector.shape_cast %11 : vector<1x16x128xf32> to vector<16x128xf32>
    %13 = vector.shape_cast %10 : vector<16x128xf32> to vector<1x16x128xf32>
    tpu.vector_store %arg4[%c0_7, %c0_8, %c0_9], %13 {strides = array<i32>} : memref<1x16x128xf32, #tpu.memory_space<vmem>>, vector<1x16x128xf32>,
    %c0_10 = arith.constant 0 : index
    %c0_11 = arith.constant 0 : index
    %c0_12 = arith.constant 0 : index
    %14 = vector.load %arg5[%c0_10, %c0_11, %c0_12] : memref<1x16x128xf32, #tpu.memory_space<vmem>>, vector<1x16x128xf32>
    %15 = vector.shape_cast %14 : vector<1x16x128xf32> to vector<16x128xf32>
    %16 = arith.addf %3, %4 : vector<16x128xf32>
    %17 = vector.shape_cast %16 : vector<16x128xf32> to vector<1x16x128xf32>
    %cst_13 = arith.constant dense<0.000000e+00> : vector<16x128xf32>
    %18 = vector.multi_reduction <add>, %17, %cst_13 [0] : vector<1x16x128xf32> to vector<16x128xf32>
    %19 = arith.addf %15, %18 : vector<16x128xf32>
    %c0_14 = arith.constant 0 : index
    %c0_15 = arith.constant 0 : index
    %c0_16 = arith.constant 0 : index
    %20 = vector.load %arg5[%c0_14, %c0_15, %c0_16] : memref<1x16x128xf32, #tpu.memory_space<vmem>>, vector<1x16x128xf32>
    %21 = vector.shape_cast %20 : vector<1x16x128xf32> to vector<16x128xf32>
    %22 = vector.shape_cast %19 : vector<16x128xf32> to vector<1x16x128xf32>
    tpu.vector_store %arg5[%c0_14, %c0_15, %c0_16], %22 {strides = array<i32>} : memref<1x16x128xf32, #tpu.memory_space<vmem>>, vector<1x16x128xf32>,
    return
  }
  func.func @transform_0(%arg0: i32, %arg1: i32) -> (i32, i32) {
    %c1_i32 = arith.constant 1 : i32
    %0 = arith.muli %arg0, %c1_i32 : i32
    %1 = arith.addi %0, %arg1 : i32
    %c0_i32 = arith.constant 0 : i32
    %c0_i32_0 = arith.constant 0 : i32
    return %1, %c0_i32 : i32, i32
  }
  func.func @transform_1(%arg0: i32, %arg1: i32) -> (i32, i32) {
    %c1_i32 = arith.constant 1 : i32
    %0 = arith.muli %arg0, %c1_i32 : i32
    %1 = arith.addi %0, %arg1 : i32
    %c0_i32 = arith.constant 0 : i32
    %c0_i32_0 = arith.constant 0 : i32
    return %1, %c0_i32 : i32, i32
  }
  func.func @transform_2(%arg0: i32, %arg1: i32) -> (i32, i32, i32) {
    %c0_i32 = arith.constant 0 : i32
    %c0_i32_0 = arith.constant 0 : i32
    %c0_i32_1 = arith.constant 0 : i32
    return %arg0, %c0_i32, %c0_i32_0 : i32, i32, i32
  }
  func.func @transform_3(%arg0: i32, %arg1: i32) -> (i32, i32, i32) {
    %c0_i32 = arith.constant 0 : i32
    %c0_i32_0 = arith.constant 0 : i32
    %c0_i32_1 = arith.constant 0 : i32
    return %arg0, %c0_i32, %c0_i32_0 : i32, i32, i32
  }
}

</mosaic_0001>

<bundles_post_ra>
// kernel: binary_dice.1
= control target key start
LH: loop header
LB: loop body
LE: loop exit
PB: predicated region body
PF: predicated region fallthrough
CT: control target
= control target key end

     0   :  { %s154_s0 = inlined_call_operand.vmem [shape: f32[16,128], index: 0, kind: input, shape index: {}]   ;;  %s155_s1 = inlined_call_operand.vmem [shape: f32[16,128], index: 1, kind: input, shape index: {}]   ;;  %s156_s2 = inlined_call_operand.vmem [shape: f32[1,16,128], index: 2, kind: output, shape index: {0}]   ;;  %s157_s3 = inlined_call_operand.vmem [shape: f32[1,16,128], index: 3, kind: output, shape index: {1}]  }
   0x1   :  { %v65_v0 = vld [vmem:[%s154_s0] sm:$0xff]  ;;  %v66_v2 = vld [vmem:[%s154_s0 + $0x8] sm:$0xff] }
   0x2   :  { %v67_v1 = vld [vmem:[%s155_s1] sm:$0xff]  ;;  %v68_v4 = vld [vmem:[%s155_s1 + $0x8] sm:$0xff] }
   0x3   :  { %v71_v3 = vmul.f32 %v67_v1, %v65_v0  ;;  %v81_v5 = vadd.f32 %v67_v1, %v65_v0  ;;  %v72_v6 = vmul.f32 %v68_v4, %v66_v2  ;;  %v82_v7 = vadd.f32 %v68_v4, %v66_v2 }
   0x5   :  { %77 = vst [vmem:[%s156_s2] sm:$0xff] %v71_v3  ;;  %87 = vst [vmem:[%s157_s3] sm:$0xff] %v81_v5 }
   0x6   :  { %78 = vst [vmem:[%s156_s2 + $0x8] sm:$0xff] %v72_v6  ;;  %88 = vst [vmem:[%s157_s3 + $0x8] sm:$0xff] %v82_v7 }

</bundles_post_ra>
